<compile_context>
chip_gen: v7x
topology: tpu7x:2x2x1
jax: 0.10.0
libtpu: 0.0.40
codegen_flags: <defaults>
</compile_context>

<pallas_src>
import functools

import jax
import jax.numpy as jnp
from jax.experimental import pallas as pl
from jax.experimental.pallas import tpu as pltpu

# ---- quantizer / layernorm static config (stand-ins for args / qconfig) ----
ROW_BLK = 8        # args.row_blocksize (== TPU sublane count -> free broadcast)
COL_BLK = 16       # args.col_blocksize (must be a power of two here)
FBIT = 8           # args.fabit
QMAX = float(2 ** (FBIT - 1) - 1)   # 127.0, symmetric range
EPS = 1e-5
_HI = jax.lax.Precision.HIGHEST


def _qlayernorm_kernel(iscale_ref, qin_ref, gamma_ref, beta_ref,
                       ecol_ref, esel_ref, out_ref, oscale_ref,
                       *, roll_like_jnp):
    """One grid step processes a (TM, H) tile of the flattened (N, H) view."""
    tm, h = qin_ref.shape
    rb = tm // ROW_BLK
    f32 = jnp.float32

    # ---- QAct_FPout: dequantize x = Qinput * Iscale ------------------------
    # Column-block -> lane expansion uses the hoisted one-hot e_col on the
    # otherwise-idle MXU (exact single-term selection at HIGHEST precision);
    # row-block -> row expansion is a free sublane broadcast (ROW_BLK == 8).
    isc_lane = jnp.dot(iscale_ref[...], ecol_ref[...],
                       precision=_HI, preferred_element_type=f32)     # (rb, h)
    x = qin_ref[...].astype(f32).reshape(rb, ROW_BLK, h) * isc_lane[:, None, :]

    # ---- nn.LayerNorm over the last (H) axis, single-pass statistics -------
    inv_h = 1.0 / h
    mean = jnp.sum(x, axis=-1, keepdims=True) * inv_h
    var = jnp.sum(x * x, axis=-1, keepdims=True) * inv_h - mean * mean
    rstd = jax.lax.rsqrt(var + EPS)
    y = (x - mean) * rstd * gamma_ref[...] + beta_ref[...]            # (rb,8,h)

    # ---- QAct_FPin: symmetric per-(ROW_BLK x COL_BLK) absmax quantization --
    rmax = jnp.max(jnp.abs(y), axis=1)                                # (rb, h)
    # Unmasked, unidirectional segmented max tree on the XLU: after
    # log2(COL_BLK) levels the lane at each block start holds the max over its
    # COL_BLK lanes (rolls always pull values from higher lane indices; the
    # wrapper probe pins which shift sign achieves that on this backend).
    bm = rmax
    s = 1
    while s < COL_BLK:
        sh = (h - s) if roll_like_jnp else s
        bm = jnp.maximum(bm, pltpu.roll(bm, shift=sh, axis=1))
        s *= 2
    # Compact (rb, ncb) scale math: select block-start lanes, then scale/recip.
    bmax = jnp.dot(bm, esel_ref[...],
                   precision=_HI, preferred_element_type=f32)         # (rb,ncb)
    scale = jnp.where(bmax > 0.0, bmax * (1.0 / QMAX), 1.0)
    oscale_ref[...] = scale
    inv_lane = jnp.dot(1.0 / scale, ecol_ref[...],
                       precision=_HI, preferred_element_type=f32)     # (rb, h)

    qy = jnp.clip(jnp.round(y * inv_lane[:, None, :]), -QMAX, QMAX)
    out_ref[...] = qy.reshape(tm, h).astype(out_ref.dtype)            # f32->int8


@functools.lru_cache(maxsize=None)
def _roll_matches_jnp():
    """Pin pltpu.roll's lane-rotation direction once per process (lets the
    segmented-max tree be mask-free and unidirectional on any backend)."""
    def probe(x_ref, o_ref):
        o_ref[...] = pltpu.roll(x_ref[...], shift=1, axis=1)

    with jax.ensure_compile_time_eval():
        x = jnp.broadcast_to(jnp.arange(128, dtype=jnp.int32), (8, 128))
        y = pl.pallas_call(
            probe, out_shape=jax.ShapeDtypeStruct((8, 128), jnp.int32))(x)
        return bool(int(y[0, 1]) == 0)   # jnp.roll: out[j] = in[j - shift]


def _vmem_capacity_bytes():
    try:
        return int(pltpu.get_tpu_info().vmem_capacity_bytes)
    except Exception:
        return 64 * 1024 * 1024          # conservative: v7x per-TensorCore VMEM


def _pick_block_rows(n_rows, hidden, vmem_cap):
    """Chip-aware row-tile size: ~6 live f32 (TM, H) temporaries dominate the
    per-step working set; leave the rest of VMEM for int8 I/O double-buffers
    and compiler scratch."""
    if vmem_cap <= 80 * 1024 * 1024:      # v7x-class: 64 MiB per TensorCore
        target_ws = 20 * 1024 * 1024
    else:                                 # v5e / v6e: 128 MiB physical VMEM
        target_ws = 48 * 1024 * 1024
    target = target_ws // max(1, hidden * 4 * 6)
    # Keep at least 2 grid steps so a "parallel" grid can feed both v7x cores.
    if n_rows >= 128:
        target = min(target, n_rows // 2)
    target = int(max(ROW_BLK, min(target, n_rows, 4096)))
    # Multiples of 64 keep the int8 (32, 128) tiling and the (RB, ncb) scale
    # blocks (RB = TM // 8 must be a multiple of 8) legal.
    for r in range(target - target % 64, 63, -64):
        if n_rows % r == 0:
            return r
    # TODO(synk): ragged token counts (e.g. ViT's 577) need row padding +
    # masking; fall back to a single full-height tile for now.
    return n_rows


@functools.partial(jax.jit,
                   static_argnames=("block_rows", "vmem_cap", "roll_like_jnp"))
def _forward(qinput, iscale, gamma, beta, *, block_rows, vmem_cap,
             roll_like_jnp):
    B, S, H = qinput.shape
    N = B * S
    assert N % ROW_BLK == 0 and H % COL_BLK == 0
    assert COL_BLK & (COL_BLK - 1) == 0, "COL_BLK must be a power of two"
    NB, ncb = N // ROW_BLK, H // COL_BLK
    assert iscale.shape == (NB, ncb)

    TM = int(block_rows)
    assert N % TM == 0 and TM % ROW_BLK == 0
    RB = TM // ROW_BLK
    assert RB % 8 == 0 or RB == NB, "scale tile must obey the (8, x) block rule"
    grid_n = N // TM

    q2d = qinput.reshape(N, H)
    g2d = gamma.reshape(1, H).astype(jnp.float32)
    b2d = beta.reshape(1, H).astype(jnp.float32)

    # Hoisted one-hot expander / selector constants: XLA constant-folds them,
    # and the constant index_map keeps them resident in VMEM across the grid.
    lane = jnp.arange(H, dtype=jnp.int32)
    blk = jnp.arange(ncb, dtype=jnp.int32)
    e_col = (lane[None, :] // COL_BLK == blk[:, None]).astype(jnp.float32)  # (ncb, H)
    e_sel = (lane[:, None] == blk[None, :] * COL_BLK).astype(jnp.float32)   # (H, ncb)

    vmem_need = (8 * TM * H * 4          # f32 temporaries (x, y, |y|, qy, ...)
                 + 2 * 2 * TM * H        # double-buffered int8 in / out tiles
                 + 2 * ncb * H * 4       # resident e_col / e_sel
                 + 4 * RB * ncb * 4      # iscale / oscale tiles (2 buffers each)
                 + 4 * H * 4)            # gamma / beta
    cp_kwargs = dict(dimension_semantics=("parallel",))
    if vmem_need > 12 * 1024 * 1024:
        # Never lower the scoped limit below 32 MiB, and leave >= 8 MiB of
        # headroom under physical VMEM for Mosaic-internal scratch.
        cap = min(vmem_cap - 8 * 1024 * 1024, 100 * 1024 * 1024)
        cp_kwargs["vmem_limit_bytes"] = int(min(max(vmem_need, 32 * 1024 * 1024),
                                                cap))

    kernel = functools.partial(_qlayernorm_kernel, roll_like_jnp=roll_like_jnp)
    out, oscale = pl.pallas_call(
        kernel,
        out_shape=(jax.ShapeDtypeStruct((N, H), jnp.int8),
                   jax.ShapeDtypeStruct((NB, ncb), jnp.float32)),
        grid=(grid_n,),
        in_specs=[
            pl.BlockSpec((RB, ncb), lambda i: (i, 0)),   # per-step Iscale tile
            pl.BlockSpec((TM, H), lambda i: (i, 0)),     # int8 activations
            pl.BlockSpec((1, H), lambda i: (0, 0)),      # gamma (resident)
            pl.BlockSpec((1, H), lambda i: (0, 0)),      # beta  (resident)
            pl.BlockSpec((ncb, H), lambda i: (0, 0)),    # e_col (resident)
            pl.BlockSpec((H, ncb), lambda i: (0, 0)),    # e_sel (resident)
        ],
        out_specs=(
            pl.BlockSpec((TM, H), lambda i: (i, 0)),     # int8 output
            pl.BlockSpec((RB, ncb), lambda i: (i, 0)),   # per-step out scales
        ),
        compiler_params=pltpu.CompilerParams(**cp_kwargs),
    )(iscale.astype(jnp.float32), q2d, g2d, b2d, e_col, e_sel)

    return out.reshape(B, S, H), oscale


def qlayernorm_forward(qinput, iscale, gamma, beta, block_rows=None):
    """QLayerNorm.forward(Qinput, Iscale) -> (Qoutput int8, scale)."""
    B, S, H = qinput.shape
    N = B * S
    vmem_cap = _vmem_capacity_bytes()
    if block_rows is None:
        block_rows = _pick_block_rows(N, H, vmem_cap)
    return _forward(qinput, iscale, gamma, beta,
                    block_rows=int(block_rows), vmem_cap=int(vmem_cap),
                    roll_like_jnp=_roll_matches_jnp())


def _reference(qinput, iscale, gamma, beta):
    """Pure-JAX reference of the same forward pass."""
    B, S, H = qinput.shape
    N = B * S
    NB, ncb = N // ROW_BLK, H // COL_BLK
    q2d = qinput.reshape(N, H).astype(jnp.float32)
    isc_full = jnp.repeat(jnp.repeat(iscale, ROW_BLK, axis=0), COL_BLK, axis=1)
    x = q2d * isc_full
    mean = x.mean(-1, keepdims=True)
    xc = x - mean
    var = (xc * xc).mean(-1, keepdims=True)
    y = xc * jax.lax.rsqrt(var + EPS) * gamma.reshape(1, H) + beta.reshape(1, H)
    yb = y.reshape(NB, ROW_BLK, ncb, COL_BLK)
    amax = jnp.max(jnp.abs(yb), axis=(1, 3))
    scale = jnp.where(amax > 0, amax / QMAX, 1.0)
    sf = jnp.repeat(jnp.repeat(scale, ROW_BLK, 0), COL_BLK, 1)
    qout = jnp.clip(jnp.round(y / sf), -QMAX, QMAX)
    return qout.reshape(B, S, H), scale


if __name__ == "__main__":
    key = jax.random.PRNGKey(0)
    k1, k2, k3, k4 = jax.random.split(key, 4)

    B, S, H = 2, 128, 128          # small but TPU-friendly (H multiple of 128)
    N = B * S
    NB, ncb = N // ROW_BLK, H // COL_BLK

    # Simulated int8-quantized activations and per-block dequant scales.
    qinput = jax.random.randint(k1, (B, S, H), -int(QMAX), int(QMAX) + 1,
                                dtype=jnp.int32).astype(jnp.int8)
    iscale = jax.random.uniform(k2, (NB, ncb), jnp.float32, 0.01, 0.05)
    gamma = 1.0 + 0.1 * jax.random.normal(k3, (H,), jnp.float32)
    beta = 0.1 * jax.random.normal(k4, (H,), jnp.float32)

    # Auto tile selection -> TM=128, grid of 2 steps (multi-step tiling path).
    out, oscale = qlayernorm_forward(qinput, iscale, gamma, beta)
    jax.block_until_ready((out, oscale))

    assert out.dtype == jnp.int8 and out.shape == (B, S, H)
    assert oscale.shape == (NB, ncb)

    ref_out, ref_scale = _reference(qinput, iscale, gamma, beta)
    scale_err = jnp.max(jnp.abs(oscale - ref_scale) /
                        (jnp.abs(ref_scale) + 1e-12))
    assert scale_err < 1e-4, f"scale mismatch: {scale_err}"
    # quantized integers may flip by 1 at exact rounding boundaries
    qdiff = jnp.max(jnp.abs(out.astype(jnp.int32) - ref_out.astype(jnp.int32)))
    assert qdiff <= 1, f"quantized output mismatch: {qdiff}"

    print("KERNEL_OK")
</pallas_src>

<mosaic_0001>
module attributes {stable_mosaic.version = 11 : i64} {
  func.func @probe(%arg0: memref<8x128xi32, #tpu.memory_space<vmem>>, %arg1: memref<8x128xi32, #tpu.memory_space<vmem>>) attributes {dimension_semantics = [], scalar_prefetch = 0 : i64, scratch_operands = 0 : i64, tpu.core_type = #tpu.core_type<tc>} {
    %c0 = arith.constant 0 : index
    %c0_0 = arith.constant 0 : index
    %0 = vector.load %arg0[%c0, %c0_0] : memref<8x128xi32, #tpu.memory_space<vmem>>, vector<8x128xi32>
    %c1_i32 = arith.constant 1 : i32
    %1 = tpu.dynamic_rotate %0 by %c1_i32 dim 1 : vector<8x128xi32>, i32 -> vector<8x128xi32>
    %c0_1 = arith.constant 0 : index
    %c0_2 = arith.constant 0 : index
    %2 = vector.load %arg1[%c0_1, %c0_2] : memref<8x128xi32, #tpu.memory_space<vmem>>, vector<8x128xi32>
    tpu.vector_store %arg1[%c0_1, %c0_2], %1 {strides = array<i32>} : memref<8x128xi32, #tpu.memory_space<vmem>>, vector<8x128xi32>,
    return
  }
}

</mosaic_0001>

<bundles_post_ra>
// kernel: tpu_custom_call.1
= control target key start
LH: loop header
LB: loop body
LE: loop exit
PB: predicated region body
PF: predicated region fallthrough
CT: control target
= control target key end

     0   :  { %6 = vsyncpa [#allocation3], 0  ;;  %s128_s0 = inlined_call_operand.hbm [shape: s32[8,128], index: 0, kind: input, shape index: {}]   ;;  %s129_s1 = inlined_call_operand.hbm [shape: s32[8,128], index: 1, kind: output, shape index: {}]  }
   0x1   :  { %7 = vsyncpa [#allocation4], 0  ;;  %s91_s6 = smov [#allocation2]   ;;  %s43_s10 = scalar_lea.hbm %s128_s0, 128 }
   0x2   :  { %s14_s7 = sshll.u32 %s91_s6, 4  ;;  %p44_p0 = scmp.ne.s32.totalorder %s128_s0, %s43_s10  ;;  %s15_s7 = int_to_ptr.vmem [resolvable:$true] %s14_s7 }
   0x3   :  { %p47_p1 = scmp.lt.u32.totalorder %s43_s10, %s128_s0 }
   0x5   :  { %p49_p2 = pnand %p47_p1, %p44_p0 }
   0x7   :  { %52 = shalt.err (!%p49_p2)
}
   0x8   :  { %s53_s15 = scalar_lea.vmem %s15_s7, 128  ;;  %p58_p4 = scmp.lt.s32.totalorder %s15_s7, %s15_s7 }
   0x9   :  { %p54_p3 = scmp.ne.s32.totalorder %s15_s7, %s53_s15  ;;  %p59_p5 = scmp.lt.s32.totalorder %s53_s15, %s53_s15 }
   0xb   :  { %p60_p6 = por %p59_p5, %p58_p4 }
   0xd   :  { %p61_p7 = pnand %p60_p6, %p54_p3 }
   0xf   :  { %64 = shalt.err (!%p61_p7)
}
  0x10   :  { %17 = dma.hbm_to_vmem [thread:$0]  %s128_s0, 128, %s15_s7, [#allocation3]  }
  0x11   :  { %87 = dma.done.wait [#allocation3], 128  }
  0x12   :  { %88 = vsyncadd [#allocation3], 4294967168  ;;  %v21_v0 = vld [vmem:[#allocation2] sm:$0xff]  ;;  %s92_s18 = smov 1   ;;  %s93_s19 = smov [#allocation5]  }
  0x13   :  { %22 = vrot.lane.b32.xlu0 %v21_v0, %s92_s18  ;;  %s31_s20 = sshll.u32 %s93_s19, 4  ;;  %s32_s20 = int_to_ptr.vmem [resolvable:$true] %s31_s20 }
  0x14   :  { %s65_s21 = scalar_lea.vmem %s32_s20, 128  ;;  %p70_p9 = scmp.lt.s32.totalorder %s32_s20, %s32_s20 }
  0x15   :  { %p66_p8 = scmp.ne.s32.totalorder %s32_s20, %s65_s21  ;;  %p71_p10 = scmp.lt.s32.totalorder %s65_s21, %s65_s21 }
  0x17   :  { %p72_p11 = por %p71_p10, %p70_p9 }
  0x19   :  { %p73_p12 = pnand %p72_p11, %p66_p8 }
  0x85   :  { %v23_v1 = vpop.permute.xlu0 %22 }
  0x86   :  { %24 = vst [vmem:[#allocation5] sm:$0xff] %v23_v1 }
  0x87   :  { %76 = shalt.err (!%p73_p12)
}
  0x88   :  { %s77_s0 = scalar_lea.hbm %s129_s1, 128 }
  0x89   :  { %p78_p13 = scmp.ne.s32.totalorder %s129_s1, %s77_s0  ;;  %p81_p0 = scmp.lt.u32.totalorder %s77_s0, %s129_s1 }
  0x8b   :  { %p83_p1 = pnand %p81_p0, %p78_p13 }
  0x8d   :  { %86 = shalt.err (!%p83_p1)
}
  0x8e   :  { %34 = dma.vmem_to_hbm [thread:$0]  %s32_s20, 128, %s129_s1, [#allocation4]  }
  0x8f   :  { %89 = dma.done.wait [#allocation4], 128  }
  0x90   :  { %90 = vsyncadd [#allocation4], 4294967168 }
  0x91   :  { %38 = vsyncpa [#allocation3], 1 }
  0x92   :  { %39 = vsyncpa [#allocation4], 1 }

</bundles_post_ra>
